<compile_context>
chip_gen: v7x
topology: tpu7x:2x2x1
jax: 0.10.0
libtpu: 0.0.40
codegen_flags: <defaults>
</compile_context>

<pallas_src>
import functools
import math

import numpy as np
import jax
import jax.numpy as jnp
from jax.experimental import pallas as pl
from jax.experimental.pallas import tpu as pltpu

_PAIRWISE_EPS = 1e-6   # torch.nn.functional.pairwise_distance default eps
_CHARB_EPS = 1e-6      # module's self.eps


def _write_partial(out_ref, part):
    # Per-tile partial sum written into element [0, 0] of this tile's private
    # lane-dense (8, 128) output block (rest zeros).  No carried state => the
    # grid axis stays "parallel" (v7x megacore); the wrapper sums all blocks.
    r8 = jax.lax.broadcasted_iota(jnp.int32, (8, 128), 0)
    c128 = jax.lax.broadcasted_iota(jnp.int32, (8, 128), 1)
    out_ref[...] = jnp.where((r8 == 0) & (c128 == 0), part, 0.0)


def _charbonnier_rowsum_kernel(x_ref, y_ref, out_ref, *, tr, n_valid_rows,
                               needs_mask):
    # Fast path (W % 128 == 0, one original row per packed row): per-row L1
    # via cross-lane reduce (XLU), no segment matrix / bf16 split / matmuls.
    a = jnp.abs(x_ref[...].astype(jnp.float32)
                - y_ref[...].astype(jnp.float32) + _PAIRWISE_EPS)   # (TR, W)
    d = jnp.sum(a, axis=-1, keepdims=True)                          # (TR, 1)
    err = jnp.sqrt(d * d + _CHARB_EPS)
    if needs_mask:
        i = pl.program_id(0)
        p = jax.lax.broadcasted_iota(jnp.int32, err.shape, 0)
        err = jnp.where(i * tr + p < n_valid_rows, err, 0.0)
    _write_partial(out_ref, jnp.sum(err))


def _charbonnier_seg_kernel(seg_ref, x_ref, y_ref, out_ref, *, n_seg, tr,
                            n_valid_rows, needs_mask):
    # General path: g original rows folded into the lane axis; per-original-row
    # L1 distance is a segmented lane reduction done on the MXU against a 0/1
    # selection matrix (hoisted to the wrapper, resident in VMEM).
    a = jnp.abs(x_ref[...].astype(jnp.float32)
                - y_ref[...].astype(jnp.float32) + _PAIRWISE_EPS)   # (TR, L)
    seg_mat = seg_ref[...]                                          # (L, n_seg) bf16 0/1

    # Exact bf16x3 split of the f32 operand: every product against the 0/1
    # weights is exact, so the segmented sums match an f32 reduction.
    a_hi = a.astype(jnp.bfloat16)
    r1 = a - a_hi.astype(jnp.float32)
    a_mid = r1.astype(jnp.bfloat16)
    a_lo = (r1 - a_mid.astype(jnp.float32)).astype(jnp.bfloat16)
    d = (jnp.dot(a_hi, seg_mat, preferred_element_type=jnp.float32)
         + jnp.dot(a_mid, seg_mat, preferred_element_type=jnp.float32)
         + jnp.dot(a_lo, seg_mat, preferred_element_type=jnp.float32))  # (TR, n_seg)

    err = jnp.sqrt(d * d + _CHARB_EPS)

    if needs_mask:
        # Original row index of element (p, s) is (i*tr + p)*n_seg + s; mask
        # both cdiv tail garbage rows and g-padding zero rows (a zero row is
        # NOT zero-contribution because of the eps terms).
        i = pl.program_id(0)
        p = jax.lax.broadcasted_iota(jnp.int32, err.shape, 0)
        s = jax.lax.broadcasted_iota(jnp.int32, err.shape, 1)
        err = jnp.where((i * tr + p) * n_seg + s < n_valid_rows, err, 0.0)

    _write_partial(out_ref, jnp.sum(err))


def _round_up(a, m):
    return ((a + m - 1) // m) * m


def l1_charbonnier_loss(x, y):
    assert x.shape == y.shape, "x and y must have the same shape"
    *lead, W = x.shape
    R = int(np.prod(lead)) if lead else 1

    x2 = jnp.reshape(x, (R, W))
    y2 = jnp.reshape(y, (R, W))

    # ---- lane-dense repack: fold g consecutive rows into the lane axis ------
    if W % 128 == 0:
        g = 1
    else:
        g = 128 // math.gcd(W, 128)
    R_g = _round_up(R, g)
    if R_g != R:
        # Pad rows so the (R, W) -> (Rp, g*W) reshape is legal; padded rows are
        # masked in-kernel (they would otherwise contribute sqrt((W*eps)^2+eps)).
        pad = R_g - R
        x2 = jnp.pad(x2, ((0, pad), (0, 0)))
        y2 = jnp.pad(y2, ((0, pad), (0, 0)))
    Rp, L = R_g // g, g * W
    x2 = x2.reshape(Rp, L)
    y2 = y2.reshape(Rp, L)
    n_seg = g

    # ---- sublane multiple for the native input dtype -------------------------
    sub = 8
    for arr in (x, y):
        sub = max(sub, 32 // max(1, arr.dtype.itemsize))

    # ---- generation-aware block sizing / scoped-VMEM budget ------------------
    try:
        vmem_cap = int(pltpu.get_tpu_info().vmem_capacity_bytes)
    except Exception:
        vmem_cap = 64 * 1024 * 1024  # conservative (v7x-sized) default
    if vmem_cap >= 96 * 1024 * 1024:          # v5e / v6e: 128 MiB physical
        vmem_limit = 64 * 1024 * 1024
        target_block_bytes = 6 * 1024 * 1024
    else:                                      # v7x: 64 MiB physical per TC
        vmem_limit = 48 * 1024 * 1024
        target_block_bytes = 4 * 1024 * 1024
    # Leave room for the resident segment matrix (bf16, lane-padded to 128).
    seg_vmem = (L * 128 * 2) * 2 if n_seg > 1 else 0
    target = max(target_block_bytes - seg_vmem, L * 4 * sub)

    # ---- row tile (packed rows), budgeted in f32-equivalent bytes ------------
    budget_rows = max(sub, (target // (L * 4)) // sub * sub)
    # v7x megacore: aim for >= 2 grid steps so the parallel axis splits TCs.
    half_cap = _round_up((Rp + 1) // 2, sub)
    tr = max(sub, min(budget_rows, half_cap, _round_up(Rp, sub)))
    grid_rows = -(-Rp // tr)                   # cdiv — masked tail, no divisor cliff
    needs_mask = (grid_rows * tr * n_seg) != R

    x_spec = pl.BlockSpec((tr, L), lambda i: (i, 0))
    y_spec = pl.BlockSpec((tr, L), lambda i: (i, 0))
    out_spec = pl.BlockSpec((8, 128), lambda i: (i, 0))
    out_shape = jax.ShapeDtypeStruct((8 * grid_rows, 128), jnp.float32)
    cparams = pltpu.CompilerParams(
        dimension_semantics=("parallel",),
        vmem_limit_bytes=vmem_limit,
    )

    if n_seg == 1:
        kernel = functools.partial(_charbonnier_rowsum_kernel, tr=tr,
                                   n_valid_rows=R, needs_mask=needs_mask)
        partials = pl.pallas_call(
            kernel,
            out_shape=out_shape,
            grid_spec=pltpu.PrefetchScalarGridSpec(
                num_scalar_prefetch=0,
                grid=(grid_rows,),
                in_specs=[x_spec, y_spec],
                out_specs=out_spec,
            ),
            compiler_params=cparams,
        )(x2, y2)
    else:
        # 0/1 segment-selection matrix, hoisted out of the kernel: column s
        # selects lanes [s*W, (s+1)*W).  Constant block index => DMA'd once and
        # kept resident across grid steps.
        lane = np.arange(L)[:, None]
        segc = np.arange(n_seg)[None, :]
        seg_np = ((lane >= segc * W) & (lane < (segc + 1) * W)).astype(np.float32)
        seg_mat = jnp.asarray(seg_np, dtype=jnp.bfloat16)

        kernel = functools.partial(_charbonnier_seg_kernel, n_seg=n_seg, tr=tr,
                                   n_valid_rows=R, needs_mask=needs_mask)
        partials = pl.pallas_call(
            kernel,
            out_shape=out_shape,
            grid_spec=pltpu.PrefetchScalarGridSpec(
                num_scalar_prefetch=0,
                grid=(grid_rows,),
                in_specs=[
                    pl.BlockSpec((L, n_seg), lambda i: (0, 0)),
                    x_spec,
                    y_spec,
                ],
                out_specs=out_spec,
            ),
            compiler_params=cparams,
        )(seg_mat, x2, y2)

    return jnp.sum(partials)


def _reference_loss(x, y):
    # pure-JAX reference mirroring the PyTorch module
    diff = jnp.sum(jnp.abs(x - y + _PAIRWISE_EPS), axis=-1)
    err = jnp.sqrt(diff * diff + _CHARB_EPS)
    return jnp.sum(err)


if __name__ == "__main__":
    key = jax.random.PRNGKey(0)
    kx, ky = jax.random.split(key)
    # NCHW, small shapes
    x = jax.random.normal(kx, (2, 4, 16, 16), dtype=jnp.float32)
    y = jax.random.normal(ky, (2, 4, 16, 16), dtype=jnp.float32)

    loss = jax.block_until_ready(l1_charbonnier_loss(x, y))
    ref = _reference_loss(x, y)
    np.testing.assert_allclose(np.asarray(loss), np.asarray(ref),
                               rtol=1e-5, atol=1e-5)

    # Extra shape that exercises the new cdiv-tail masking path (Rp=12, tr=8).
    kx2, ky2 = jax.random.split(jax.random.PRNGKey(1))
    xb = jax.random.normal(kx2, (2, 3, 16, 16), dtype=jnp.float32)
    yb = jax.random.normal(ky2, (2, 3, 16, 16), dtype=jnp.float32)
    loss_b = jax.block_until_ready(l1_charbonnier_loss(xb, yb))
    np.testing.assert_allclose(np.asarray(loss_b),
                               np.asarray(_reference_loss(xb, yb)),
                               rtol=1e-5, atol=1e-5)

    print("KERNEL_OK")
</pallas_src>

<mosaic_0001>
module attributes {stable_mosaic.version = 11 : i64} {
  func.func @_charbonnier_seg_kernel(%arg0: i32, %arg1: memref<128x8xbf16, #tpu.memory_space<vmem>>, %arg2: memref<8x128xf32, #tpu.memory_space<vmem>>, %arg3: memref<8x128xf32, #tpu.memory_space<vmem>>, %arg4: memref<8x128xf32, #tpu.memory_space<vmem>>) attributes {dimension_semantics = [#tpu.dimension_semantics<parallel>], iteration_bounds = array<i64: 2>, scalar_prefetch = 0 : i64, scratch_operands = 0 : i64, tpu.core_type = #tpu.core_type<tc>, window_params = [{pipeline_mode = #tpu.pipeline_mode<synchronous>, transform_indices = @transform_0, window_bounds = array<i64: 128, 8>}, {transform_indices = @transform_1, window_bounds = array<i64: 8, 128>}, {transform_indices = @transform_2, window_bounds = array<i64: 8, 128>}, {transform_indices = @transform_3, window_bounds = array<i64: 8, 128>}]} {
    %c0 = arith.constant 0 : index
    %c0_0 = arith.constant 0 : index
    %0 = vector.load %arg2[%c0, %c0_0] : memref<8x128xf32, #tpu.memory_space<vmem>>, vector<8x128xf32>
    %c0_1 = arith.constant 0 : index
    %c0_2 = arith.constant 0 : index
    %1 = vector.load %arg3[%c0_1, %c0_2] : memref<8x128xf32, #tpu.memory_space<vmem>>, vector<8x128xf32>
    %2 = arith.subf %0, %1 : vector<8x128xf32>
    %cst = arith.constant 9.99999997E-7 : f32
    %3 = vector.broadcast %cst : f32 to vector<8x128xf32>
    %4 = arith.addf %2, %3 : vector<8x128xf32>
    %5 = math.absf %4 : vector<8x128xf32>
    %c0_3 = arith.constant 0 : index
    %c0_4 = arith.constant 0 : index
    %6 = vector.load %arg1[%c0_3, %c0_4] : memref<128x8xbf16, #tpu.memory_space<vmem>>, vector<128x8xbf16>
    %7 = arith.truncf %5 : vector<8x128xf32> to vector<8x128xbf16>
    %8 = arith.extf %7 : vector<8x128xbf16> to vector<8x128xf32>
    %9 = arith.subf %5, %8 : vector<8x128xf32>
    %10 = arith.truncf %9 : vector<8x128xf32> to vector<8x128xbf16>
    %11 = arith.extf %10 : vector<8x128xbf16> to vector<8x128xf32>
    %12 = arith.subf %9, %11 : vector<8x128xf32>
    %13 = arith.truncf %12 : vector<8x128xf32> to vector<8x128xbf16>
    %cst_5 = arith.constant dense<0.000000e+00> : vector<8x8xf32>
    %14 = tpu.matmul %7, %6, %cst_5 {dimension_numbers = #tpu.dot_dimension_numbers<[1], [0], [0], [1], [0, 0, 1, 1], [], []>} : vector<8x128xbf16>, vector<128x8xbf16>, vector<8x8xf32> -> vector<8x8xf32>
    %cst_6 = arith.constant dense<0.000000e+00> : vector<8x8xf32>
    %15 = tpu.matmul %10, %6, %cst_6 {dimension_numbers = #tpu.dot_dimension_numbers<[1], [0], [0], [1], [0, 0, 1, 1], [], []>} : vector<8x128xbf16>, vector<128x8xbf16>, vector<8x8xf32> -> vector<8x8xf32>
    %16 = arith.addf %14, %15 : vector<8x8xf32>
    %cst_7 = arith.constant dense<0.000000e+00> : vector<8x8xf32>
    %17 = tpu.matmul %13, %6, %cst_7 {dimension_numbers = #tpu.dot_dimension_numbers<[1], [0], [0], [1], [0, 0, 1, 1], [], []>} : vector<8x128xbf16>, vector<128x8xbf16>, vector<8x8xf32> -> vector<8x8xf32>
    %18 = arith.addf %16, %17 : vector<8x8xf32>
    %19 = arith.mulf %18, %18 : vector<8x8xf32>
    %cst_8 = arith.constant 9.99999997E-7 : f32
    %20 = vector.broadcast %cst_8 : f32 to vector<8x8xf32>
    %21 = arith.addf %19, %20 : vector<8x8xf32>
    %22 = math.sqrt %21 : vector<8x8xf32>
    %23 = vector.shape_cast %22 : vector<8x8xf32> to vector<1x8x8xf32>
    %cst_9 = arith.constant dense<0.000000e+00> : vector<1xf32>
    %24 = vector.multi_reduction <add>, %23, %cst_9 [1, 2] : vector<1x8x8xf32> to vector<1xf32>
    %25 = vector.shape_cast %24 : vector<1xf32> to vector<1x1x1xf32>
    %26 = vector.extract %25[0, 0, 0] : f32 from vector<1x1x1xf32>
    %27 = tpu.iota {dimensions = array<i32: 0>} : vector<8x128xi32>
    %28 = tpu.iota {dimensions = array<i32: 1>} : vector<8x128xi32>
    %c0_i32 = arith.constant 0 : i32
    %29 = vector.broadcast %c0_i32 : i32 to vector<8x128xi32>
    %30 = arith.cmpi eq, %27, %29 : vector<8x128xi32>
    %c0_i32_10 = arith.constant 0 : i32
    %31 = vector.broadcast %c0_i32_10 : i32 to vector<8x128xi32>
    %32 = arith.cmpi eq, %28, %31 : vector<8x128xi32>
    %33 = arith.andi %30, %32 : vector<8x128xi1>
    %cst_11 = arith.constant 0.000000e+00 : f32
    %34 = vector.broadcast %26 : f32 to vector<8x128xf32>
    %35 = vector.broadcast %cst_11 : f32 to vector<8x128xf32>
    %36 = arith.select %33, %34, %35 : vector<8x128xi1>, vector<8x128xf32>
    %c0_12 = arith.constant 0 : index
    %c0_13 = arith.constant 0 : index
    %37 = vector.load %arg4[%c0_12, %c0_13] : memref<8x128xf32, #tpu.memory_space<vmem>>, vector<8x128xf32>
    tpu.vector_store %arg4[%c0_12, %c0_13], %36 {strides = array<i32>} : memref<8x128xf32, #tpu.memory_space<vmem>>, vector<8x128xf32>,
    return
  }
  func.func @transform_0(%arg0: i32) -> (i32, i32) {
    %c0_i32 = arith.constant 0 : i32
    %c0_i32_0 = arith.constant 0 : i32
    %c0_i32_1 = arith.constant 0 : i32
    return %c0_i32, %c0_i32_0 : i32, i32
  }
  func.func @transform_1(%arg0: i32) -> (i32, i32) {
    %c0_i32 = arith.constant 0 : i32
    %c0_i32_0 = arith.constant 0 : i32
    return %arg0, %c0_i32 : i32, i32
  }
  func.func @transform_2(%arg0: i32) -> (i32, i32) {
    %c0_i32 = arith.constant 0 : i32
    %c0_i32_0 = arith.constant 0 : i32
    return %arg0, %c0_i32 : i32, i32
  }
  func.func @transform_3(%arg0: i32) -> (i32, i32) {
    %c0_i32 = arith.constant 0 : i32
    %c0_i32_0 = arith.constant 0 : i32
    return %arg0, %c0_i32 : i32, i32
  }
}

</mosaic_0001>

<bundles_post_ra>
// kernel: tpu_custom_call.1
= control target key start
LH: loop header
LB: loop body
LE: loop exit
PB: predicated region body
PF: predicated region fallthrough
CT: control target
= control target key end

     0   :  { %8 = vsyncpa [#allocation3], 0  ;;  %s904_s0 = inlined_call_operand.vmem [shape: bf16[128,8], index: 0, kind: input, shape index: {}]   ;;  %s905_s1 = inlined_call_operand.vmem [shape: f32[16,128], index: 1, kind: input, shape index: {}]   ;;  %s906_s2 = inlined_call_operand.vmem [shape: f32[16,128], index: 2, kind: input, shape index: {}]   ;;  %s907_s3 = inlined_call_operand.hbm [shape: f32[16,128], index: 3, kind: output, shape index: {}]  }
   0x1   :  { %10 = vsyncpa [#allocation3 + $0x1], 0  ;;  %s747_s12 = smov 0   ;;  %s749_s13 = smov 0  }
   0x2   :  { %s751_s14 = smov 0   ;;  %s753_s15 = smov 0  }
   0x3 LB: > { %s768_s16 = sadd.s32 4294967295, %s722_s15   ;;  %s496_s17 = sadd.s32 4294967294, %s722_s15   ;;  %s722_s15 = sphi %s753_s15, %s913_s15   ;;  %s718_s14 = sphi %s751_s14, %s912_s14   ;;  %s714_s13 = sphi %s749_s13, %s911_s13   ;;  %s710_s12 = sphi %s747_s12, %s910_s12  }
   0x4   : > { %s772_s18 = sadd.s32 1, %s722_s15   ;;  %s96_s19 = sadd.s32 1, %s718_s14 }
   0x5   : > { %s93_s20 = ssub.s32 %s722_s15, %s772_s18  ;;  %p106_p0 = scmp.ne.s32.totalorder %s718_s14, %s714_s13 }
   0x6   : > { %p94_p1 = scmp.eq.s32.totalorder %s93_s20, 0  ;;  %p107_p2 = scmp.eq.s32.totalorder %s768_s16, 1 }
   0x7   : > { %p112_p3 = scmp.ne.s32.totalorder %s714_s13, %s710_s12  ;;  %p113_p4 = scmp.eq.s32.totalorder %s496_s17, 1 }
   0x8   : > { %s783_s21 = scalar_select %p94_p1, %s718_s14, %s96_s19  }
   0x9   : > { %p785_p5 = por %p107_p2, %p106_p0  ;;  %p789_p6 = por %p113_p4, %p112_p3 }
   0xa   : > { %p499_p7 = scmp.ge.s32.totalorder %s722_s15, 1  ;;  %p148_p8 = scmp.lt.s32.totalorder %s722_s15, 3 }
   0xc   : > { %p149_p9 = pnand %p499_p7, %p148_p8 }
   0xd   : > { %v650_v0 = vld [vmem:[%s904_s0] sm:$0xff] (!%p149_p9)   ;;  %v724_v1 = vmov (!%p149_p9), 0.0   ;;  %v651_v2 = vld [vmem:[%s904_s0 + $0x8] sm:$0xff] (!%p149_p9)   ;;  %p175_p10 = scmp.lt.s32.totalorder (!%p149_p9), %s768_s16, 1  ;;  %vm725_vm0 = vmmov (!%p149_p9), 0   ;;  %v652_v3 = vld [vmem:[%s904_s0 + $0x10] sm:$0xff] (!%p149_p9)   ;;  %v401_v45 = vlaneseq (!%p149_p9) }
   0xe   : > { %152 = sbr.rel (%p149_p9) target bundleno = 532 (0x214), region = 32  ;;  %562 = vmatprep.subr.bf16.mxu0 (!%p149_p9), %v724_v1  ;;  %542 = vmatprep.subr.bf16.mxu1 (!%p149_p9), %v724_v1  ;;  %v653_v7 = vld [vmem:[%s904_s0 + $0x18] sm:$0xff] (!%p149_p9)   ;;  %v654_v9 = vld [vmem:[%s904_s0 + $0x20] sm:$0xff] (!%p149_p9)   ;;  %v655_v11 = vld [vmem:[%s904_s0 + $0x28] sm:$0xff] (!%p149_p9)   ;;  %vm390_vm2 = vcmask (!%p149_p9), 64512   ;;  %s172_s30 = sand.u32 (!%p149_p9), 1, %s714_s13  }
   0xf   : > { %563 = vmatpush3.bf16.msra.mxu0 (!%p149_p9), %v650_v0  ;;  %543 = vmatpush3.bf16.msra.mxu1 (!%p149_p9), %v650_v0  ;;  %v656_v13 = vld [vmem:[%s904_s0 + $0x30] sm:$0xff] (!%p149_p9)   ;;  %v657_v15 = vld [vmem:[%s904_s0 + $0x38] sm:$0xff] (!%p149_p9)   ;;  %v402_v46 = vshrl.u32 (!%p149_p9), %v401_v45, 7  ;;  %v404_v47 = vand.u32 (!%p149_p9), 127, %v401_v45  ;;  %s512_s5 = sshll.u32 (!%p149_p9), %s768_s16, 7  ;;  %s412_s17 = scalar_lea.sflag (!%p149_p9), [#allocation3], %s172_s30 }
  0x10   : > { %564 = vmatprep.subr.bf16.mxu0 (!%p149_p9), %v724_v1  ;;  %578 = vmatprep.mubr.msk.bf16.mxu0 (!%p149_p9), %vm725_vm0, %v724_v1  ;;  %s862_s11 = scalar_lea.hbm (!%p149_p9), %s907_s3, %s512_s5 }
  0x11   : > { %544 = vmatprep.subr.bf16.mxu1 (!%p149_p9), %v724_v1  ;;  %558 = vmatprep.mubr.msk.bf16.mxu1 (!%p149_p9), %vm725_vm0, %v724_v1  ;;  %vm405_vm4 = vcmp.eq.s32.totalorder (!%p149_p9), %v402_v46, 0  ;;  %vm406_vm5 = vcmp.eq.s32.totalorder (!%p149_p9), %v404_v47, 0 }
  0x12   : > { %vm407_vm6 = vmand (!%p149_p9), %vm405_vm4, %vm406_vm5 }
  0x13   : > { %565 = vmatpush3.bf16.msra.mxu0 (!%p149_p9), %v651_v2  ;;  %545 = vmatpush3.bf16.msra.mxu1 (!%p149_p9), %v651_v2 }
  0x14   : > { %566 = vmatprep.subr.bf16.mxu0 (!%p149_p9), %v724_v1  ;;  %546 = vmatprep.subr.bf16.mxu1 (!%p149_p9), %v724_v1 }
  0x15   : > { %s176_s28 = scalar_select %p175_p10, %s768_s16, 1 }
  0x16   : > { %s726_s16 = smov [#allocation2]  }
  0x17   : > { %s501_s4 = sshll.u32 %s176_s28, 3  ;;  %567 = vmatpush3.bf16.msra.mxu0 %v652_v3  ;;  %547 = vmatpush3.bf16.msra.mxu1 %v652_v3  ;;  %s664_s20 = sshll.u32 %s726_s16, 4  ;;  %s665_s20 = int_to_ptr.vmem [resolvable:$false] %s664_s20 }
  0x18   : > { %s178_s7 = scalar_lea.vmem %s905_s1, %s501_s4  ;;  %s182_s10 = scalar_lea.vmem %s906_s2, %s501_s4  ;;  %568 = vmatprep.subr.bf16.mxu0 %v724_v1  ;;  %548 = vmatprep.subr.bf16.mxu1 %v724_v1 }
  0x19   : > { %v184_v4 = vld [vmem:[%s178_s7] sm:$0xff]  ;;  %s500_s4 = sshll.u32 %s172_s30, 3  ;;  %s666_s24 = scalar_lea.vmem %s665_s20, 256 }
  0x1a   : > { %v185_v5 = vld [vmem:[%s182_s10] sm:$0xff]  ;;  %s174_s6 = scalar_lea.vmem [#allocation2], %s500_s4 }
  0x1b   : > { %v186_v6 = vsub.f32 %v184_v4, %v185_v5  ;;  %569 = vmatpush3.bf16.msra.mxu0 %v653_v7  ;;  %549 = vmatpush3.bf16.msra.mxu1 %v653_v7  ;;  %s425_s7 = sshll.u32 %s174_s6, 4  ;;  %s864_s7 = int_to_ptr.vmem [resolvable:$true] %s425_s7 }
  0x1c   : > { %570 = vmatprep.subr.bf16.mxu0 %v724_v1  ;;  %550 = vmatprep.subr.bf16.mxu1 %v724_v1  ;;  %s660_s19 = scalar_lea.vmem %s864_s7, 128  ;;  %p667_p0 = scmp.lt.s32.totalorder %s864_s7, %s665_s20 }
  0x1d   : > { %v187_v8 = vadd.f32 1e-06, %v186_v6  ;;  %p661_p11 = scmp.ne.s32.totalorder %s864_s7, %s660_s19  ;;  %p668_p1 = scmp.lt.s32.totalorder %s666_s24, %s660_s19 }
  0x1f   : > { %v188_v10 = vand.u32 2147483647, %v187_v8  ;;  %571 = vmatpush3.bf16.msra.mxu0 %v654_v9  ;;  %551 = vmatpush3.bf16.msra.mxu1 %v654_v9  ;;  %p662_p12 = pnand %p661_p11, %p785_p5  ;;  %p669_p2 = por %p668_p1, %p667_p0 }
  0x20   : > { %572 = vmatprep.subr.bf16.mxu0 %v724_v1  ;;  %552 = vmatprep.subr.bf16.mxu1 %v724_v1 }
  0x21   : > { %v205_v12 = vpack.c.bf16 %v188_v10, %v188_v10  ;;  %p663_p13 = pneg %p662_p12 }
  0x23   : > { %573 = vmatpush3.bf16.msra.mxu0 %v655_v11  ;;  %553 = vmatpush3.bf16.msra.mxu1 %v655_v11  ;;  %v206_v14 = vunpack.c.l.bf16 %v205_v12  ;;  %p670_p3 = pnand %p669_p2, %p663_p13 }
  0x24   : > { %574 = vmatprep.subr.bf16.mxu0 %v724_v1  ;;  %554 = vmatprep.subr.bf16.mxu1 %v724_v1 }
  0x25   : > { %v207_v16 = vsub.f32 %v188_v10, %v206_v14 }
  0x27   : > { %575 = vmatpush3.bf16.msra.mxu0 %v656_v13  ;;  %555 = vmatpush3.bf16.msra.mxu1 %v656_v13  ;;  %v208_v17 = vpack.c.bf16 %v207_v16, %v207_v16 }
  0x28   : > { %576 = vmatprep.subr.bf16.mxu0 %v724_v1  ;;  %556 = vmatprep.subr.bf16.mxu1 %v724_v1 }
  0x29   : > { %v209_v18 = vunpack.c.l.bf16 %v208_v17 }
  0x2b   : > { %577 = vmatpush3.bf16.msra.mxu0 %v657_v15  ;;  %557 = vmatpush3.bf16.msra.mxu1 %v657_v15  ;;  %v210_v19 = vsub.f32 %v207_v16, %v209_v18 }
  0x2c   : > { %582 = vmatprep.subr.bf16.mxu0 %v724_v1 }
  0x2d   : > { %v211_v20 = vpack.c.bf16 %v210_v19, %v210_v19 }
  0x2e   : > { %579 = vmatmul.mubr.bf16.vlgmr.msra.gmra.mrb[0].mxu0 %v205_v12  ;;  %559 = vmatmul.mubr.bf16.vlgmr.msra.gmra.mrb[0].mxu1 %v208_v17 }
  0x2f   : > { %583 = vmatpush3.bf16.msra.mxu0 %v650_v0  ;;  %598 = vmatprep.mubr.msk.bf16.mxu0 %vm725_vm0, %v724_v1 }
  0x30   : > { %584 = vmatprep.subr.bf16.mxu0 %v724_v1 }
  0x33   : > { %585 = vmatpush3.bf16.msra.mxu0 %v651_v2 }
  0x34   : > { %586 = vmatprep.subr.bf16.mxu0 %v724_v1 }
  0x37   : > { %587 = vmatpush3.bf16.msra.mxu0 %v652_v3 }
  0x38   : > { %588 = vmatprep.subr.bf16.mxu0 %v724_v1 }
  0x3b   : > { %589 = vmatpush3.bf16.msra.mxu0 %v653_v7 }
  0x3c   : > { %590 = vmatprep.subr.bf16.mxu0 %v724_v1 }
  0x3f   : > { %591 = vmatpush3.bf16.msra.mxu0 %v654_v9 }
  0x40   : > { %592 = vmatprep.subr.bf16.mxu0 %v724_v1 }
  0x43   : > { %593 = vmatpush3.bf16.msra.mxu0 %v655_v11 }
  0x44   : > { %594 = vmatprep.subr.bf16.mxu0 %v724_v1 }
  0x47   : > { %595 = vmatpush3.bf16.msra.mxu0 %v656_v13 }
  0x48   : > { %596 = vmatprep.subr.bf16.mxu0 %v724_v1 }
  0x4b   : > { %597 = vmatpush3.bf16.msra.mxu0 %v657_v15 }
  0x4e   : > { %599 = vmatmul.mubr.bf16.vlgmr.msra.gmra.mrb[0].mxu0 %v211_v20 }
 0x101   : > { %v294_v21 = vpop.f32.mrb[0].mxu1 }
 0x102   : > { %v560_v22 = vpop.f32.mrb[1].mxu1 }
 0x103   : > { %v297_v23 = vpop.f32.mrb[2].mxu1 }
 0x104   : > { %v561_v24 = vpop.f32.mrb[3].mxu1 }
 0x121   : > { %v374_v25 = vpop.f32.mrb[0].mxu0 }
 0x122   : > { %v602_v26 = vadd.f32 %v374_v25, %v294_v21  ;;  %v600_v27 = vpop.f32.mrb[1].mxu0 }
 0x123   : > { %v377_v28 = vpop.f32.mrb[2].mxu0 }
 0x124   : > { %v381_v29 = vmul.f32 %v602_v26, %v602_v26  ;;  %v601_v30 = vpop.f32.mrb[3].mxu0 }
 0x126   : > { %v382_v31 = vadd.f32 1e-06, %v381_v29 }
 0x128   : > { %658 = vrsqrt.f32 %v382_v31  ;;  %vm385_vm1 = vcmp.eq.f32.partialorder %v382_v31, inf  ;;  %v388_v34 = vand.u32 2147483648, %v382_v31  ;;  %vm387_vm3 = vcmp.eq.f32.partialorder %v382_v31, 0.0 }
 0x132   : > { %v659_v32 = vpop.eup %658 }
 0x133   : > { %v384_v33 = vmul.f32 %v659_v32, %v382_v31 }
 0x135   : > { %v386_v35 = vsel %vm385_vm1, %v382_v31, %v384_v33 }
 0x136   : > { %v389_v36 = vsel %vm387_vm3, %v388_v34, %v386_v35 }
 0x137   : > { %v391_v37 = vsel %vm390_vm2, %v389_v36, 0.0 }
 0x138   : > { %392 = vadd.xlane.f32.xlu0 %v391_v37 }
 0x1c5   : > { %v393_v38 = vpop.xlane.xlu0 %392 }
 0x1c6   : > { %v394_v39 = vrot.slane %v393_v38, 4 }
 0x1c8   : > { %v395_v40 = vadd.f32 %v394_v39, %v393_v38 }
 0x1ca   : > { %v396_v41 = vrot.slane %v395_v40, 2 }
 0x1cc   : > { %v397_v42 = vadd.f32 %v396_v41, %v395_v40 }
 0x1ce   : > { %v398_v43 = vrot.slane %v397_v42, 1 }
 0x1d0   : > { %v399_v44 = vadd.f32 %v398_v43, %v397_v42 }
 0x1d2   : > { %607 = vpush %v399_v44 }
 0x203   : > { %s608_s8 = spop %607 }
 0x204   : > { %v408_v48 = vstv %s608_s8 }
 0x205   : > { %v409_v49 = vsel %vm407_vm6, %v408_v48, 0.0 }
 0x206   : > { %410 = vst [vmem:[%s174_s6] sm:$0xff] %v409_v49 }
 0x207   : > { %673 = shalt.err (!%p670_p3)
}
 0x208   : > { %s674_s25 = scalar_lea.hbm %s862_s11, 128  ;;  %s678_s28 = scalar_lea.hbm %s907_s3, 256 }
 0x209   : > { %p675_p4 = scmp.ne.s32.totalorder %s862_s11, %s674_s25  ;;  %p679_p9 = scmp.lt.u32.totalorder %s862_s11, %s907_s3 }
 0x20a   : > { %p680_p10 = scmp.lt.u32.totalorder %s678_s28, %s674_s25  ;;  %p682_p12 = scmp.lt.u32.totalorder %s674_s25, %s862_s11 }
 0x20b   : > { %p676_p7 = pnand %p675_p4, %p785_p5 }
 0x20c   : > { %p681_p11 = por %p680_p10, %p679_p9 }
 0x20d   : > { %p677_p8 = pneg %p676_p7 }
 0x20e   : > { %p683_p13 = por %p682_p12, %p681_p11 }
 0x210   : > { %p684_p0 = pnand %p683_p13, %p677_p8 }
 0x212   : > { %687 = shalt.err (!%p684_p0)
}
 0x213   : > { %609 = dma.vmem_to_hbm [thread:$0]  (%p785_p5), %s864_s7, 128, %s862_s11, %s412_s17  }
 0x214 PF: > { %p615_p1 = scmp.ge.s32.totalorder %s722_s15, 2  ;;  %s437_s4 = sand.u32 1, %s710_s12  }
 0x215   : > { %s438_s5 = scalar_lea.sflag [#allocation3], %s437_s4 }
 0x216   : > { %p612_p2 = pnand %p615_p1, %p789_p6 }
 0x218   : > { %705 = dma.done.wait (!%p612_p2), %s438_s5, 128  }
 0x219   : > { %707 = vsyncadd (!%p612_p2), %s438_s5, 4294967168  ;;  %p13_p3 = scmp.ge.s32.totalorder %s772_s18, 4   ;;  %s910_s12 = smov %s714_s13 }
 0x21a   : > { %s911_s13 = smov %s718_s14  ;;  %s912_s14 = smov %s783_s21 }
 0x21b   : > { %s913_s15 = smov %s772_s18  ;;  %15 = sbr.rel (!%p13_p3) target bundleno = 3 (0x3), region = 70 }
 0x222   :  { %443 = vsyncpa [#allocation3], 1 }
 0x223   :  { %445 = vsyncpa [#allocation3 + $0x1], 1 }

</bundles_post_ra>
